<compile_context>
chip_gen: v5e
topology: v5e:2x2
jax: 0.10.0
libtpu: 0.0.40
codegen_flags: <defaults>
</compile_context>

<pallas_src>
import functools

import jax
import jax.numpy as jnp
from jax.experimental import pallas as pl
from jax.experimental.pallas import tpu as pltpu

_LANE = 128


def _hsigmoid_kernel(x_ref, o_ref, *, scale, offset, min_value, max_value):
    x = x_ref[...]
    dt = x.dtype
    y = x * jnp.asarray(scale, dt) + jnp.asarray(offset, dt)
    y = jnp.minimum(jnp.maximum(y, jnp.asarray(min_value, dt)),
                    jnp.asarray(max_value, dt))
    o_ref[...] = y


def _chip_kind() -> str:
    try:
        return jax.devices()[0].device_kind.lower()
    except Exception:  # pragma: no cover - defensive
        return ""


def _block_config():
    """Returns (block_bytes, vmem_limit_bytes_or_None, use_core_parallel)."""
    kind = _chip_kind()
    if "v7" in kind:
        # 4 x 8 MiB buffers = 32 MiB; raise the scoped limit (64 MiB physical).
        return 8 * 1024 * 1024, 48 * 1024 * 1024, True
    if "v6" in kind:
        # 4 x 4 MiB buffers = 16 MiB; fits the 32 MiB scoped default.
        return 4 * 1024 * 1024, None, False
    # v5e (16 MiB scoped default) and unknown chips: stay conservative.
    return 2 * 1024 * 1024, None, False


def paddle_hsigmoid(
    x: jax.Array,
    bias: float = 3.0,
    divisor: float = 6.0,
    min_value: float = 0.0,
    max_value: float = 1.0,
    inplace: bool = False,
) -> jax.Array:
    assert divisor != 0
    orig_shape = x.shape
    orig_dtype = x.dtype
    n = x.size
    if n == 0:
        return x

    # Fold constants: (x*1.2 + bias)/divisor == x*(1.2/divisor) + bias/divisor.
    scale = 1.2 / divisor
    offset = bias / divisor

    itemsize = jnp.dtype(orig_dtype).itemsize
    # Packed native tile height: 8 rows for 4-byte, 16 for 2-byte, 32 for 1-byte.
    sublane = max(8, 32 // itemsize)

    # Lane-dense 2D slab; rows padded to the dtype's sublane count only.
    rows = -(-n // _LANE)
    rows_pad = -(-rows // sublane) * sublane
    padded_n = rows_pad * _LANE

    block_bytes, vmem_limit, use_core_parallel = _block_config()

    # Row-tile sized for ~block_bytes/buffer, sublane-aligned, clamped to the
    # slab height (rows_pad is sublane-aligned, so min() stays aligned).
    trow_target = max(sublane,
                      (block_bytes // (_LANE * itemsize)) // sublane * sublane)
    trow = min(trow_target, rows_pad)

    flat = x.reshape(-1)
    needs_pad = padded_n != n
    if needs_pad:
        # At most sublane*128 - 1 elements; the common aligned case skips this.
        flat = jnp.pad(flat, (0, padded_n - n))
    x2d = flat.reshape(rows_pad, _LANE)

    # Ragged last block: trow need not divide rows_pad; Pallas masks the
    # out-of-bounds part of the final output block.
    grid = (pl.cdiv(rows_pad, trow),)

    kernel = functools.partial(
        _hsigmoid_kernel,
        scale=scale,
        offset=offset,
        min_value=min_value,
        max_value=max_value,
    )

    cost = pl.CostEstimate(flops=4 * n, transcendentals=0,
                           bytes_accessed=2 * n * itemsize)

    def _call(dim_semantics):
        cp_kwargs = {"dimension_semantics": dim_semantics}
        if vmem_limit is not None:
            cp_kwargs["vmem_limit_bytes"] = vmem_limit
        extra = {"input_output_aliases": {0: 0}} if inplace else {}
        return pl.pallas_call(
            kernel,
            out_shape=jax.ShapeDtypeStruct((rows_pad, _LANE), orig_dtype),
            grid_spec=pltpu.PrefetchScalarGridSpec(
                num_scalar_prefetch=0,
                grid=grid,
                in_specs=[pl.BlockSpec((trow, _LANE), lambda i: (i, 0))],
                out_specs=pl.BlockSpec((trow, _LANE), lambda i: (i, 0)),
            ),
            compiler_params=pltpu.CompilerParams(**cp_kwargs),
            cost_estimate=cost,
            **extra,
        )(x2d)

    if use_core_parallel:
        # v7x: shard the grid axis across both TensorCores.
        try:
            out2d = _call((pltpu.CORE_PARALLEL,))
        except Exception:
            out2d = _call(("parallel",))
    else:
        out2d = _call(("parallel",))

    if needs_pad:
        return out2d.reshape(-1)[:n].reshape(orig_shape)
    return out2d.reshape(orig_shape)  # view-only reshape, no extra HBM pass


def _reference(x, bias=3.0, divisor=6.0, min_value=0.0, max_value=1.0):
    y = (x * 1.2 + bias) / divisor
    return jnp.clip(y, min_value, max_value)


if __name__ == "__main__":
    key = jax.random.PRNGKey(0)
    k1, k2, k3 = jax.random.split(key, 3)

    # 1) NCHW f32 feature map (size divisible by 1024 -> zero-copy path).
    x1 = jax.random.normal(k1, (2, 4, 16, 16), dtype=jnp.float32) * 4.0
    y1 = jax.block_until_ready(paddle_hsigmoid(x1))
    assert y1.shape == x1.shape and y1.dtype == x1.dtype
    # Slightly loose atol: folded constants round ~1 ulp differently.
    assert jnp.allclose(y1, _reference(x1), atol=1e-5, rtol=1e-5)

    # 2) Ragged f32 shape (945 elements, not a multiple of 128 -> pad path).
    x2 = jax.random.normal(k2, (3, 5, 7, 9), dtype=jnp.float32) * 4.0
    y2 = jax.block_until_ready(paddle_hsigmoid(x2))
    assert y2.shape == x2.shape and y2.dtype == x2.dtype
    assert jnp.allclose(y2, _reference(x2), atol=1e-5, rtol=1e-5)

    # 3) bf16 input (exercises the dtype-dependent (16,128) sublane alignment).
    x3 = (jax.random.normal(k3, (2, 4, 16, 16), dtype=jnp.float32) * 4.0
          ).astype(jnp.bfloat16)
    y3 = jax.block_until_ready(paddle_hsigmoid(x3))
    assert y3.shape == x3.shape and y3.dtype == x3.dtype
    y3_ref = _reference(x3.astype(jnp.float32))
    assert jnp.allclose(y3.astype(jnp.float32), y3_ref, atol=2e-2, rtol=2e-2)

    print("KERNEL_OK")
</pallas_src>

<mosaic_0001>
module attributes {stable_mosaic.version = 11 : i64} {
  func.func @_hsigmoid_kernel(%arg0: i32, %arg1: memref<16x128xf32, #tpu.memory_space<vmem>>, %arg2: memref<16x128xf32, #tpu.memory_space<vmem>>) attributes {dimension_semantics = [#tpu.dimension_semantics<parallel>], iteration_bounds = array<i64: 1>, scalar_prefetch = 0 : i64, scratch_operands = 0 : i64, tpu.core_type = #tpu.core_type<tc>, window_params = [{transform_indices = @transform_0, window_bounds = array<i64: 16, 128>}, {transform_indices = @transform_1, window_bounds = array<i64: 16, 128>}]} {
    %c0 = arith.constant 0 : index
    %c0_0 = arith.constant 0 : index
    %0 = vector.load %arg1[%c0, %c0_0] : memref<16x128xf32, #tpu.memory_space<vmem>>, vector<16x128xf32>
    %cst = arith.constant 2.000000e-01 : f32
    %1 = vector.broadcast %cst : f32 to vector<16x128xf32>
    %2 = arith.mulf %0, %1 : vector<16x128xf32>
    %cst_1 = arith.constant 5.000000e-01 : f32
    %3 = vector.broadcast %cst_1 : f32 to vector<16x128xf32>
    %4 = arith.addf %2, %3 : vector<16x128xf32>
    %cst_2 = arith.constant 0.000000e+00 : f32
    %5 = vector.broadcast %cst_2 : f32 to vector<16x128xf32>
    %6 = arith.maximumf %4, %5 : vector<16x128xf32>
    %cst_3 = arith.constant 1.000000e+00 : f32
    %7 = vector.broadcast %cst_3 : f32 to vector<16x128xf32>
    %8 = arith.minimumf %6, %7 : vector<16x128xf32>
    %c0_4 = arith.constant 0 : index
    %c0_5 = arith.constant 0 : index
    %9 = vector.load %arg2[%c0_4, %c0_5] : memref<16x128xf32, #tpu.memory_space<vmem>>, vector<16x128xf32>
    tpu.vector_store %arg2[%c0_4, %c0_5], %8 {strides = array<i32>} : memref<16x128xf32, #tpu.memory_space<vmem>>, vector<16x128xf32>,
    return
  }
  func.func @transform_0(%arg0: i32) -> (i32, i32) {
    %c0_i32 = arith.constant 0 : i32
    %c0_i32_0 = arith.constant 0 : i32
    return %arg0, %c0_i32 : i32, i32
  }
  func.func @transform_1(%arg0: i32) -> (i32, i32) {
    %c0_i32 = arith.constant 0 : i32
    %c0_i32_0 = arith.constant 0 : i32
    return %arg0, %c0_i32 : i32, i32
  }
}

</mosaic_0001>

<bundles_post_ra>
// kernel: tpu_custom_call.1
= control target key start
LH: loop header
LB: loop body
LE: loop exit
PB: predicated region body
PF: predicated region fallthrough
CT: control target
= control target key end

     0   :  { %6 = vsyncpa [#allocation3], 0  ;;  %s132_s0 = inlined_call_operand.hbm [shape: f32[16,128], index: 0, kind: input, shape index: {}]   ;;  %s133_s1 = inlined_call_operand.hbm [shape: f32[16,128], index: 1, kind: output, shape index: {}]  }
   0x1   :  { %7 = vsyncpa [#allocation4], 0  ;;  %s12_s8 = sshll.u32 %s132_s0, 4  ;;  %s112_s9 = smov [#allocation2]   ;;  %s13_s8 = int_to_ptr.hbm [resolvable:$true] %s12_s8 }
   0x2   :  { %s14_s10 = sshll.u32 %s112_s9, 4  ;;  %s113_s11 = smov 128   ;;  %s15_s10 = int_to_ptr.vmem [resolvable:$true] %s14_s10 }
   0x3   :  { %s114_s12 = smov 8  }
   0x4   :  { %20 = dma.hbm_to_vmem [thread:$0]  %s13_s8, 256, %s15_s10, [#allocation3], %s113_s11, %s113_s11, %s114_s12  }
   0x5   :  { %108 = dma.done.wait [#allocation3], 256  }
   0x6   :  { %109 = vsyncadd [#allocation3], 4294967040  ;;  %v25_v0 = vld [vmem:[#allocation2] sm:$0xff]  ;;  %v26_v1 = vld [vmem:[#allocation2 + $0x8] sm:$0xff]  ;;  %s115_s13 = smov [#allocation5]   ;;  %s43_s16 = sshll.u32 %s133_s1, 4  ;;  %s44_s16 = int_to_ptr.hbm [resolvable:$true] %s43_s16 }
   0x7   :  { %v27_v2 = vmul.f32 0.2, %v25_v0  ;;  %v28_v3 = vmul.f32 0.2, %v26_v1  ;;  %s41_s14 = sshll.u32 %s115_s13, 4  ;;  %s42_s14 = int_to_ptr.vmem [resolvable:$true] %s41_s14 }
   0x9   :  { %v29_v4 = vadd.f32 0.5, %v27_v2  ;;  %v30_v5 = vadd.f32 0.5, %v28_v3 }
   0xb   :  { %v31_v6 = vmax.f32 %v29_v4, 0.0  ;;  %v32_v7 = vmax.f32 %v30_v5, 0.0 }
   0xd   :  { %v33_v8 = vmin.f32 %v31_v6, 1.0  ;;  %v34_v9 = vmin.f32 %v32_v7, 1.0 }
   0xf   :  { %35 = vst [vmem:[#allocation5] sm:$0xff] %v33_v8 }
  0x10   :  { %36 = vst [vmem:[#allocation5 + $0x8] sm:$0xff] %v34_v9 }
  0x11   :  { %49 = dma.vmem_to_hbm [thread:$0]  %s42_s14, 256, %s44_s16, [#allocation4], %s113_s11, %s113_s11, %s114_s12  }
  0x12   :  { %110 = dma.done.wait [#allocation4], 256  }
  0x13   :  { %111 = vsyncadd [#allocation4], 4294967040 }
  0x14   :  { %54 = vsyncpa [#allocation3], 1 }
  0x15   :  { %55 = vsyncpa [#allocation4], 1 }

</bundles_post_ra>
